<compile_context>
chip_gen: v5e
topology: v5e:2x2
jax: 0.10.0
libtpu: 0.0.40
codegen_flags: <defaults>
</compile_context>

<pallas_src>
import functools

import jax
import jax.numpy as jnp
from jax.experimental import pallas as pl
from jax.experimental.pallas import tpu as pltpu

_LANE = 128
_MIB = 1024 * 1024


def _round_up(x, m):
    return ((x + m - 1) // m) * m


def _query_vmem_bytes():
    # Trace-time hardware query; fall back to the smallest per-TC VMEM (v7x, 64 MiB).
    try:
        info = pltpu.get_tpu_info()
        v = int(getattr(info, "vmem_capacity_bytes", 0) or 0)
        if v > 0:
            return v
    except Exception:
        pass
    return 64 * _MIB


_VMEM_BYTES = _query_vmem_bytes()
_BIG_VMEM = _VMEM_BYTES >= 100 * _MIB                      # v5e/v6e (128 MiB) vs v7x (64 MiB)
_VMEM_LIMIT = min(int(_VMEM_BYTES * 3 // 4), 96 * _MIB)    # ~96 MiB on v5e/v6e, 48 MiB on v7x

# Generation-aware tile caps.
_TM_CAP = 1024 if _BIG_VMEM else 512
_TN_CAP = 2048 if _BIG_VMEM else 1024
_TK_CAP = 512
_FULL_K_MAX = 2048   # small-K fast path threshold (drop the reduction grid axis)


def _choose_tile(dim, cap, align):
    """Pick a tile for an already-`align`-padded dim: prefer the largest tile
    whose round-up padding wastes <= 25% of the dim."""
    if dim <= cap:
        return dim, dim
    t = cap
    while t >= align:
        padded = _round_up(dim, t)
        if (padded - dim) * 4 <= dim:
            return t, padded
        t //= 2
    return align, _round_up(dim, align)   # unreachable (dim is align-padded), kept for safety


def _plan_kn(num_inputs, num_neurons):
    K0 = _round_up(num_inputs, _LANE)
    N0 = _round_up(num_neurons, _LANE)
    if K0 <= _FULL_K_MAX:
        TK, Kp = K0, K0                   # fast path: full reduction in one dot
    else:
        TK, Kp = _choose_tile(K0, _TK_CAP, _LANE)
    TN, Np = _choose_tile(N0, _TN_CAP, _LANE)
    return TK, TN, Kp, Np


def _plan_m(batch, compute_dtype):
    align = 16 if compute_dtype == jnp.bfloat16 else 8   # bf16 sublane packing
    M0 = _round_up(batch, align)
    TM, Mp = _choose_tile(M0, _TM_CAP, align)
    return TM, Mp, align


# ----------------------------- kernels ---------------------------------------


def _linear_kernel_fullk(x_ref, wt_ref, b_ref, o_ref):
    # Single dot over the full (padded) reduction axis; bias fused in epilogue.
    acc = jnp.dot(x_ref[...], wt_ref[...], preferred_element_type=jnp.float32)
    o_ref[...] = (acc + b_ref[...].astype(jnp.float32)).astype(o_ref.dtype)


def _linear_kernel_ktiled_f32(x_ref, wt_ref, b_ref, o_ref):
    # f32 output: accumulate directly into the resident output block (no scratch).
    @pl.when(pl.program_id(2) == 0)
    def _init():
        o_ref[...] = jnp.zeros_like(o_ref)

    o_ref[...] += jnp.dot(x_ref[...], wt_ref[...], preferred_element_type=jnp.float32)

    @pl.when(pl.program_id(2) == pl.num_programs(2) - 1)
    def _finalize():
        o_ref[...] += b_ref[...].astype(jnp.float32)


def _linear_kernel_ktiled(x_ref, wt_ref, b_ref, o_ref, acc_ref):
    # non-f32 output: f32 VMEM scratch accumulator.
    @pl.when(pl.program_id(2) == 0)
    def _init():
        acc_ref[...] = jnp.zeros_like(acc_ref)

    acc_ref[...] += jnp.dot(x_ref[...], wt_ref[...], preferred_element_type=jnp.float32)

    @pl.when(pl.program_id(2) == pl.num_programs(2) - 1)
    def _finalize():
        o_ref[...] = (acc_ref[...] + b_ref[...].astype(jnp.float32)).astype(o_ref.dtype)


# ----------------------------- wrapper ----------------------------------------


@functools.partial(jax.jit, static_argnames=("use_bf16",))
def linear_regression_forward(x, weight_t, bias, *, use_bf16=False):
    """Forward pass equivalent to torch.nn.Linear(num_inputs, num_neurons).

    Args:
      x:        (batch, num_inputs) float32
      weight_t: torch_weight.T, either raw (num_inputs, num_neurons) or
                pre-padded/cast via prepare_linear_params (preferred: avoids a
                per-call HBM pad/cast pass on the parameters).
      bias:     (num_neurons,) — always passed unpadded (padding it is trivial).
      use_bf16: cast operands to bf16 for the MXU (f32 accumulation kept).
                Recommended on v6e/v7x; numerics differ from f32 torch Linear.
    Returns:
      (batch, num_neurons) in x.dtype.
    """
    batch, num_inputs = x.shape
    num_neurons = bias.shape[0]
    out_dtype = x.dtype
    compute_dtype = jnp.bfloat16 if use_bf16 else x.dtype

    TK, TN, Kp, Np = _plan_kn(num_inputs, num_neurons)
    TM, Mp, min_tm = _plan_m(batch, compute_dtype)

    in_bytes = jnp.dtype(compute_dtype).itemsize
    out_bytes = jnp.dtype(out_dtype).itemsize
    use_scratch = (out_dtype != jnp.float32) and (Kp > TK)

    # Shrink tiles until double-buffered blocks fit the scoped-VMEM budget.
    budget = int(_VMEM_LIMIT * 0.7)

    def _tile_bytes(tm, tk, tn):
        b = 2 * (tm * tk + tk * tn) * in_bytes + 2 * tm * tn * out_bytes
        if use_scratch:
            b += tm * tn * 4
        return b

    while _tile_bytes(TM, TK, TN) > budget and TN > _LANE:
        TN //= 2
    while _tile_bytes(TM, TK, TN) > budget and TK > _LANE and Kp > _FULL_K_MAX:
        TK //= 2

    # v7x has 2 TensorCores: make sure the parallel (M, N) grid has >= 2 blocks.
    if (Mp // TM) * (Np // TN) == 1:
        if TN > _LANE:
            TN //= 2
        elif TM >= 2 * min_tm and (TM // 2) % min_tm == 0:
            TM //= 2

    # Activations: pad to aligned shape + cast per call (they change every step).
    xp = x
    if (Mp, Kp) != (batch, num_inputs):
        xp = jnp.pad(x, ((0, Mp - batch), (0, Kp - num_inputs)))
    xp = xp.astype(compute_dtype)

    # Parameters: prefer the pre-padded (Kp, Np) layout from prepare_linear_params.
    if weight_t.shape == (Kp, Np):
        wtp = weight_t.astype(compute_dtype)   # no-op if already compute_dtype
    else:
        assert weight_t.shape == (num_inputs, num_neurons), weight_t.shape
        wtp = jnp.pad(
            weight_t, ((0, Kp - num_inputs), (0, Np - num_neurons))
        ).astype(compute_dtype)

    bp = jnp.pad(
        bias.reshape(1, num_neurons).astype(jnp.float32),
        ((0, 0), (0, Np - num_neurons)),
    )

    m_blocks, n_blocks, k_blocks = Mp // TM, Np // TN, Kp // TK

    # Advisory cost estimate reflecting tiled re-reads of x (x N-blocks) and W (x M-blocks).
    cost = pl.CostEstimate(
        flops=2 * Mp * Np * Kp,
        transcendentals=0,
        bytes_accessed=(Mp * Kp * n_blocks + Kp * Np * m_blocks) * in_bytes
        + Mp * Np * out_bytes,
    )

    if k_blocks == 1:
        # Small-K fast path: no reduction axis, no accumulator, bias fused.
        grid = (m_blocks, n_blocks)
        kernel = _linear_kernel_fullk
        in_specs = [
            pl.BlockSpec((TM, TK), lambda i, j: (i, 0)),    # x tile
            pl.BlockSpec((TK, TN), lambda i, j: (0, j)),    # W^T tile
            pl.BlockSpec((1, TN), lambda i, j: (0, j)),     # bias tile
        ]
        out_specs = pl.BlockSpec((TM, TN), lambda i, j: (i, j))
        scratch_shapes = []
        dim_sem = ("parallel", "parallel")
    else:
        grid = (m_blocks, n_blocks, k_blocks)               # K (reduction) innermost
        in_specs = [
            pl.BlockSpec((TM, TK), lambda i, j, k: (i, k)),
            pl.BlockSpec((TK, TN), lambda i, j, k: (k, j)),
            pl.BlockSpec((1, TN), lambda i, j, k: (0, j)),
        ]
        out_specs = pl.BlockSpec((TM, TN), lambda i, j, k: (i, j))
        dim_sem = ("parallel", "parallel", "arbitrary")
        if out_dtype == jnp.float32:
            kernel = _linear_kernel_ktiled_f32               # accumulate in o_ref
            scratch_shapes = []
        else:
            kernel = _linear_kernel_ktiled
            scratch_shapes = [pltpu.VMEM((TM, TN), jnp.float32)]

    # NOTE: pipeline_mode=pl.Buffered(3) on the x / W^T specs is a tuning knob
    # worth sweeping when per-step compute is tiny; default double-buffering kept.
    out = pl.pallas_call(
        kernel,
        out_shape=jax.ShapeDtypeStruct((Mp, Np), out_dtype),
        grid_spec=pltpu.PrefetchScalarGridSpec(
            num_scalar_prefetch=0,
            grid=grid,
            in_specs=in_specs,
            out_specs=out_specs,
            scratch_shapes=scratch_shapes,
        ),
        compiler_params=pltpu.CompilerParams(
            dimension_semantics=dim_sem,
            vmem_limit_bytes=_VMEM_LIMIT,
        ),
        cost_estimate=cost,
    )(xp, wtp, bp)

    if (Mp, Np) != (batch, num_neurons):
        out = out[:batch, :num_neurons]
    return out


# ----------------------------- params -----------------------------------------


def init_linear_params(key, num_inputs, num_neurons, dtype=jnp.float32):
    """Deterministic init mimicking torch.nn.Linear's default
    uniform(-1/sqrt(in_features), 1/sqrt(in_features)); weight stored in
    (num_inputs, num_neurons) layout (== torch_weight.T) so forward never
    transposes it."""
    kw, kb = jax.random.split(key)
    bound = 1.0 / jnp.sqrt(jnp.asarray(num_inputs, dtype))
    weight_t = jax.random.uniform(
        kw, (num_inputs, num_neurons), dtype=dtype, minval=-bound, maxval=bound
    )
    bias = jax.random.uniform(
        kb, (num_neurons,), dtype=dtype, minval=-bound, maxval=bound
    )
    return weight_t, bias


def prepare_linear_params(weight_t, bias, *, use_bf16=False):
    """One-time pad + cast of the weight to the padded (Kp, Np) layout the kernel
    consumes, so the per-call forward never re-pads / re-casts parameters."""
    num_inputs, num_neurons = weight_t.shape
    compute_dtype = jnp.bfloat16 if use_bf16 else weight_t.dtype
    _, _, Kp, Np = _plan_kn(num_inputs, num_neurons)
    wtp = jnp.pad(
        weight_t, ((0, Kp - num_inputs), (0, Np - num_neurons))
    ).astype(compute_dtype)
    return wtp, bias   # bias stays unpadded (padded cheaply per call)


# ----------------------------- demo / test ------------------------------------

if __name__ == "__main__":
    key = jax.random.PRNGKey(0)
    k_x, k_p = jax.random.split(key)

    # Small shapes consistent with LinearRegression(num_inputs, num_neurons).
    batch, num_inputs, num_neurons = 8, 32, 16

    x = jax.random.normal(k_x, (batch, num_inputs), dtype=jnp.float32)
    weight_t, bias = init_linear_params(k_p, num_inputs, num_neurons)
    y_ref = x @ weight_t + bias                    # plain-JAX reference (x @ W.T + b)

    # f32 path, parameters pre-padded once at init time.
    w_f32, b_f32 = prepare_linear_params(weight_t, bias, use_bf16=False)
    y = jax.block_until_ready(linear_regression_forward(x, w_f32, b_f32))
    assert y.shape == (batch, num_neurons)
    assert jnp.allclose(y, y_ref, atol=1e-5, rtol=1e-5)

    # bf16-operand path (f32 accumulation) — recommended default on v6e/v7x;
    # looser tolerance since operands are rounded to bf16.
    w_bf16, b_bf16 = prepare_linear_params(weight_t, bias, use_bf16=True)
    y_bf = jax.block_until_ready(
        linear_regression_forward(x, w_bf16, b_bf16, use_bf16=True)
    )
    assert y_bf.shape == (batch, num_neurons)
    assert jnp.allclose(y_bf, y_ref, atol=2e-2, rtol=2e-2)

    print("KERNEL_OK")
</pallas_src>

<mosaic_0001>
module attributes {stable_mosaic.version = 11 : i64} {
  func.func @_linear_kernel_fullk(%arg0: i32, %arg1: i32, %arg2: memref<8x128xf32, #tpu.memory_space<vmem>>, %arg3: memref<128x128xf32, #tpu.memory_space<vmem>>, %arg4: memref<1x128xf32, #tpu.memory_space<vmem>>, %arg5: memref<8x128xf32, #tpu.memory_space<vmem>>) attributes {dimension_semantics = [#tpu.dimension_semantics<parallel>, #tpu.dimension_semantics<parallel>], iteration_bounds = array<i64: 1, 1>, scalar_prefetch = 0 : i64, scratch_operands = 0 : i64, tpu.core_type = #tpu.core_type<tc>, window_params = [{transform_indices = @transform_0, window_bounds = array<i64: 8, 128>}, {transform_indices = @transform_1, window_bounds = array<i64: 128, 128>}, {transform_indices = @transform_2, window_bounds = array<i64: 1, 128>}, {transform_indices = @transform_3, window_bounds = array<i64: 8, 128>}]} {
    %c0 = arith.constant 0 : index
    %c0_0 = arith.constant 0 : index
    %0 = vector.load %arg2[%c0, %c0_0] : memref<8x128xf32, #tpu.memory_space<vmem>>, vector<8x128xf32>
    %c0_1 = arith.constant 0 : index
    %c0_2 = arith.constant 0 : index
    %1 = vector.load %arg3[%c0_1, %c0_2] : memref<128x128xf32, #tpu.memory_space<vmem>>, vector<128x128xf32>
    %cst = arith.constant dense<0.000000e+00> : vector<8x128xf32>
    %2 = tpu.matmul %0, %1, %cst {dimension_numbers = #tpu.dot_dimension_numbers<[1], [0], [0], [1], [0, 0, 1, 1], [], []>} : vector<8x128xf32>, vector<128x128xf32>, vector<8x128xf32> -> vector<8x128xf32>
    %c0_3 = arith.constant 0 : index
    %c0_4 = arith.constant 0 : index
    %3 = vector.load %arg4[%c0_3, %c0_4] : memref<1x128xf32, #tpu.memory_space<vmem>>, vector<1x128xf32>
    %4 = vector.broadcast %3 : vector<1x128xf32> to vector<8x128xf32>
    %5 = arith.addf %2, %4 : vector<8x128xf32>
    %c0_5 = arith.constant 0 : index
    %c0_6 = arith.constant 0 : index
    %6 = vector.load %arg5[%c0_5, %c0_6] : memref<8x128xf32, #tpu.memory_space<vmem>>, vector<8x128xf32>
    tpu.vector_store %arg5[%c0_5, %c0_6], %5 {strides = array<i32>} : memref<8x128xf32, #tpu.memory_space<vmem>>, vector<8x128xf32>,
    return
  }
  func.func @transform_0(%arg0: i32, %arg1: i32) -> (i32, i32) {
    %c0_i32 = arith.constant 0 : i32
    %c0_i32_0 = arith.constant 0 : i32
    return %arg0, %c0_i32 : i32, i32
  }
  func.func @transform_1(%arg0: i32, %arg1: i32) -> (i32, i32) {
    %c0_i32 = arith.constant 0 : i32
    %c0_i32_0 = arith.constant 0 : i32
    return %c0_i32, %arg1 : i32, i32
  }
  func.func @transform_2(%arg0: i32, %arg1: i32) -> (i32, i32) {
    %c0_i32 = arith.constant 0 : i32
    %c0_i32_0 = arith.constant 0 : i32
    return %c0_i32, %arg1 : i32, i32
  }
  func.func @transform_3(%arg0: i32, %arg1: i32) -> (i32, i32) {
    %c0_i32 = arith.constant 0 : i32
    return %arg0, %arg1 : i32, i32
  }
}

</mosaic_0001>

<bundles_post_ra>
// kernel: linear_regression_forward.1
= control target key start
LH: loop header
LB: loop body
LE: loop exit
PB: predicated region body
PF: predicated region fallthrough
CT: control target
= control target key end

     0   :  { %8 = vsyncpa [#allocation3], 0  ;;  %s183_s0 = inlined_call_operand.vmem [shape: f32[8,128], index: 0, kind: input, shape index: {}]   ;;  %s184_s1 = inlined_call_operand.hbm [shape: f32[128,128], index: 1, kind: input, shape index: {}]   ;;  %s185_s2 = inlined_call_operand.vmem [shape: f32[1,128], index: 2, kind: input, shape index: {}]   ;;  %s186_s3 = inlined_call_operand.hbm [shape: f32[8,128], index: 3, kind: output, shape index: {}]  }
   0x1   :  { %9 = vsyncpa [#allocation4], 0  ;;  %s16_s14 = sshll.u32 %s184_s1, 4  ;;  %s147_s15 = smov [#allocation2]   ;;  %s17_s14 = int_to_ptr.hbm [resolvable:$true] %s16_s14 }
   0x2   :  { %s18_s16 = sshll.u32 %s147_s15, 4  ;;  %s148_s17 = smov 128   ;;  %s19_s16 = int_to_ptr.vmem [resolvable:$true] %s18_s16 }
   0x3   :  { %s149_s18 = smov 8  }
   0x4   :  { %24 = dma.hbm_to_vmem [thread:$0]  %s17_s14, 2048, %s19_s16, [#allocation3], %s148_s17, %s148_s17, %s149_s18  }
   0x5   :  { %143 = dma.done.wait [#allocation3], 2048  }
   0x6   :  { %144 = vsyncadd [#allocation3], 4294965248  ;;  %v47_v0 = vld [vmem:[#allocation2 + $0x78] sm:$0xff]  ;;  %v46_v1 = vld [vmem:[#allocation2 + $0x70] sm:$0xff]  ;;  %s150_s22 = smov [#allocation5]   ;;  %s80_s26 = sshll.u32 %s186_s3, 4  ;;  %s81_s26 = int_to_ptr.hbm [resolvable:$true] %s80_s26 }
   0x7   :  { %52 = vmatpush.msra.mxu0 %v47_v0  ;;  %v45_v2 = vld [vmem:[#allocation2 + $0x68] sm:$0xff]  ;;  %v44_v3 = vld [vmem:[#allocation2 + $0x60] sm:$0xff]  ;;  %v43_v4 = vld [vmem:[#allocation2 + $0x58] sm:$0xff]  ;;  %s78_s23 = sshll.u32 %s150_s22, 4  ;;  %s79_s23 = int_to_ptr.vmem [resolvable:$true] %s78_s23 }
   0x8   :  { %v42_v5 = vld [vmem:[#allocation2 + $0x50] sm:$0xff]  ;;  %v41_v6 = vld [vmem:[#allocation2 + $0x48] sm:$0xff]  ;;  %v40_v7 = vld [vmem:[#allocation2 + $0x40] sm:$0xff] }
   0x9   :  { %53 = vmatpush.msra.mxu0 %v46_v1  ;;  %v39_v8 = vld [vmem:[#allocation2 + $0x38] sm:$0xff]  ;;  %v38_v9 = vld [vmem:[#allocation2 + $0x30] sm:$0xff]  ;;  %v37_v10 = vld [vmem:[#allocation2 + $0x28] sm:$0xff] }
   0xa   :  { %v36_v11 = vld [vmem:[#allocation2 + $0x20] sm:$0xff]  ;;  %v35_v12 = vld [vmem:[#allocation2 + $0x18] sm:$0xff]  ;;  %v34_v13 = vld [vmem:[#allocation2 + $0x10] sm:$0xff] }
   0xb   :  { %54 = vmatpush.msra.mxu0 %v45_v2  ;;  %v33_v14 = vld [vmem:[#allocation2 + $0x8] sm:$0xff]  ;;  %v32_v15 = vld [vmem:[#allocation2] sm:$0xff] }
   0xc   :  { %v31_v16 = vld [vmem:[%s183_s0] sm:$0xff] }
   0xd   :  { %55 = vmatpush.msra.mxu0 %v44_v3  ;;  %v94_v17 = vld [vmem:[%s185_s2] ss:$0 sm:$0xff] }
   0xf   :  { %56 = vmatpush.msra.mxu0 %v43_v4 }
  0x11   :  { %57 = vmatpush.msra.mxu0 %v42_v5 }
  0x13   :  { %58 = vmatpush.msra.mxu0 %v41_v6 }
  0x15   :  { %59 = vmatpush.msra.mxu0 %v40_v7 }
  0x17   :  { %60 = vmatpush.msra.mxu0 %v39_v8 }
  0x19   :  { %61 = vmatpush.msra.mxu0 %v38_v9 }
  0x1b   :  { %62 = vmatpush.msra.mxu0 %v37_v10 }
  0x1d   :  { %63 = vmatpush.msra.mxu0 %v36_v11 }
  0x1f   :  { %64 = vmatpush.msra.mxu0 %v35_v12 }
  0x21   :  { %65 = vmatpush.msra.mxu0 %v34_v13 }
  0x23   :  { %66 = vmatpush.msra.mxu0 %v33_v14 }
  0x25   :  { %67 = vmatpush.msra.mxu0 %v32_v15 }
  0x26   :  { %68 = vmatmul.f32.vlgmr.msra.gmra.mxu0 %v31_v16 }
  0xa3   :  { %v69_v18 = vpop.f32.mrf.mxu0 }
  0xa4   :  { %v70_v19 = vadd.f32 %v94_v17, %v69_v18 }
  0xa6   :  { %72 = vst [vmem:[#allocation5] sm:$0xff] %v70_v19 }
  0xa7   :  { %83 = dma.vmem_to_hbm [thread:$0]  %s79_s23, 128, %s81_s26, [#allocation4]  }
  0xa8   :  { %145 = dma.done.wait [#allocation4], 128  }
  0xa9   :  { %146 = vsyncadd [#allocation4], 4294967168 }
  0xaa   :  { %88 = vsyncpa [#allocation3], 1 }
  0xab   :  { %89 = vsyncpa [#allocation4], 1 }

</bundles_post_ra>
